<compile_context>
chip_gen: v5e
topology: v5e:2x2
jax: 0.10.0
libtpu: 0.0.40
codegen_flags: <defaults>
</compile_context>

<pallas_src>
import jax
import jax.numpy as jnp
from jax.experimental import pallas as pl
from jax.experimental.pallas import tpu as pltpu

# ---------------- configuration (small, consistent with the module) ----------------
SELF_STATE_DIM = 6
AGENT_STATE_DIM = 7
INPUT_DIM = SELF_STATE_DIM + AGENT_STATE_DIM          # 13
WR_DIMS = (64, 32)
WH_DIMS = (64, 32)
X_DIM = 32                                            # == WR_DIMS[-1] == WH_DIMS[-1]
HIDDEN_CHANNELS = 32                                  # fixed in the module
FINAL_STATE_DIM = 32
PLANNING_DIMS = (64, 1)
HUMAN_NUM = 4
OTHER_ROBOT_NUM = 2
N_AGENTS = HUMAN_NUM + OTHER_ROBOT_NUM
BATCH = 2

# edge-type order for the stacked GraphConv weights (one GraphConv per edge type,
# as produced by to_hetero):
#   0 robot->human, 1 human->robot, 2 other->robot, 3 robot->other,
#   4 other->human, 5 human->other, 6 human->human, 7 other->other
NUM_EDGE_TYPES = 8

LANE = 128                      # slab lane width
PAD_IN = 8                      # raw per-agent features (6/7) zero-padded to 8
IN_LANES = 64                   # merged input: 8 + 6*8 = 56, padded to 64 lanes


# ------------------------- static parameter-slab layout -----------------------------
def _build_layouts():
    # Row blocks pack several matrices side-by-side in lanes (column offsets are
    # multiples of 32); each entry is (name, K, N, col0).  Block height = max K,
    # rounded up to 8 rows.
    row_blocks = [
        [("wr_w1", PAD_IN, WR_DIMS[0], 0), ("wh_w1", PAD_IN, WH_DIMS[0], 64)],
        [("wo_w1", PAD_IN, WH_DIMS[0], 0)],
        [("wr_w2", WR_DIMS[0], WR_DIMS[1], 0),
         ("wh_w2", WH_DIMS[0], WH_DIMS[1], 32),
         ("wo_w2", WH_DIMS[0], WH_DIMS[1], 64)],
        [("c1_Wr", 3 * X_DIM, HIDDEN_CHANNELS, 0),                 # fused robot-node conv1
         ("c2_Wr", 3 * HIDDEN_CHANNELS, FINAL_STATE_DIM, 32),      # fused robot-node conv2
         ("v_w1", FINAL_STATE_DIM, PLANNING_DIMS[0], 64)],
        [("c1_Wh", 3 * X_DIM + X_DIM, HIDDEN_CHANNELS, 0),         # fused human-node conv1 (K=128)
         ("c1_Wo", 3 * X_DIM + X_DIM, HIDDEN_CHANNELS, 32)],       # fused other-node conv1 (K=128)
        [("v_w2", PLANNING_DIMS[0], LANE, 0)],                     # (64,1) padded to (64,128)
    ]
    w_layout, row = {}, 0
    for blk in row_blocks:
        height = 0
        for name, k, n, c0 in blk:
            w_layout[name] = (row, c0, k, n)
            height = max(height, k)
        row += ((height + 7) // 8) * 8

    b_entries = [
        ("wr_b1", WR_DIMS[0]), ("wr_b2", WR_DIMS[1]),
        ("wh_b1", WH_DIMS[0]), ("wh_b2", WH_DIMS[1]),
        ("wo_b1", WH_DIMS[0]), ("wo_b2", WH_DIMS[1]),
        ("c1_br", HIDDEN_CHANNELS), ("c1_bh", HIDDEN_CHANNELS), ("c1_bo", HIDDEN_CHANNELS),
        ("c2_br", FINAL_STATE_DIM),
        ("v_b1", PLANNING_DIMS[0]), ("v_b2", LANE),
    ]
    bias_row0 = row
    b_layout = {name: (i, n) for i, (name, n) in enumerate(b_entries)}
    bias_rows = ((len(b_entries) + 7) // 8) * 8
    return w_layout, b_layout, bias_row0, bias_rows, bias_row0 + bias_rows


W_LAYOUT, B_LAYOUT, BIAS_ROW0, BIAS_ROWS, SLAB_ROWS = _build_layouts()     # SLAB_ROWS = 384


# ------------------------------- Pallas kernel --------------------------------------
def value_network_kernel(x_ref, p_ref, out_ref):
    f32 = jnp.float32
    tb = x_ref.shape[0]                         # batch tile (static)

    def weight(name):                           # static slice of the packed slab
        r0, c0, k, n = W_LAYOUT[name]
        return p_ref[r0:r0 + k, c0:c0 + n]

    bias_block = p_ref[BIAS_ROW0:BIAS_ROW0 + BIAS_ROWS, :]   # one aligned (16,128) load

    def bias(name):
        r, n = B_LAYOUT[name]
        return bias_block[r:r + 1, 0:n]

    def dense(x, wname, bname, relu=True):
        y = jnp.dot(x, weight(wname), preferred_element_type=f32) + bias(bname)
        return jax.nn.relu(y) if relu else y

    # ---- carve the merged lane-dense input; stack agents agent-major / sample-minor ----
    x = x_ref[...]                                               # (tb, 64)
    self_x = x[:, 0:PAD_IN]                                      # (tb, 8)
    h_in = jnp.concatenate(
        [x[:, PAD_IN * (1 + j): PAD_IN * (2 + j)] for j in range(HUMAN_NUM)],
        axis=0)                                                  # (Hn*tb, 8), human-major
    o_in = jnp.concatenate(
        [x[:, PAD_IN * (1 + HUMAN_NUM + j): PAD_IN * (2 + HUMAN_NUM + j)]
         for j in range(OTHER_ROBOT_NUM)],
        axis=0)                                                  # (On*tb, 8), other-major

    # ---- per-agent-type embedding MLPs (ReLU, ReLU) over the whole batch tile ----
    r = dense(dense(self_x, "wr_w1", "wr_b1"), "wr_w2", "wr_b2")     # (tb, 32)
    H = dense(dense(h_in, "wh_w1", "wh_b1"), "wh_w2", "wh_b2")       # (Hn*tb, 32)
    O = dense(dense(o_in, "wo_w1", "wo_b1"), "wo_w2", "wo_b2")       # (On*tb, 32)

    # per-sample group sums: O(tb) static-slice adds (no O(tb^2) selection matmuls)
    def group_sum(A, n):
        s = A[0:tb]
        for j in range(1, n):
            s = s + A[j * tb:(j + 1) * tb]
        return s

    # ---- one hetero GraphConv layer, fused per destination node type ----
    # per_sample = [r | sum_o | sum_h]; the pre-fused weights match this column order
    # and already fold the "exclude self" correction and the root (no-bias) terms.
    def hetero_conv(r, H, O, prefix, robot_only):
        sum_h = group_sum(H, HUMAN_NUM)                              # (tb, 32)
        sum_o = group_sum(O, OTHER_ROBOT_NUM)                        # (tb, 32)
        per_sample = jnp.concatenate([r, sum_o, sum_h], axis=-1)     # (tb, 96)
        r_out = dense(per_sample, prefix + "_Wr", prefix + "_br")    # K=96
        if robot_only:
            return r_out, None, None
        ps_h = jnp.concatenate([per_sample] * HUMAN_NUM, axis=0)         # (Hn*tb, 96)
        ps_o = jnp.concatenate([per_sample] * OTHER_ROBOT_NUM, axis=0)   # (On*tb, 96)
        h_out = dense(jnp.concatenate([ps_h, H], axis=-1), prefix + "_Wh", prefix + "_bh")  # K=128
        o_out = dense(jnp.concatenate([ps_o, O], axis=-1), prefix + "_Wo", prefix + "_bo")  # K=128
        return r_out, h_out, o_out

    r1, h1, o1 = hetero_conv(r, H, O, "c1", robot_only=False)
    r2, _, _ = hetero_conv(r1, h1, o1, "c2", robot_only=True)   # only the robot node feeds the head

    # ---- value_net MLP (ReLU on hidden, no ReLU on output); lane-dense store ----
    hid = dense(r2, "v_w1", "v_b1")                              # (tb, 64)
    out_ref[...] = dense(hid, "v_w2", "v_b2", relu=False)        # (tb, 128); column 0 = value


# --------------------------- parameter fusion / packing ------------------------------
def _fuse_conv(rel_w, rel_b, root_w):
    """Fuse the 8 per-edge-type GraphConv weights into one wide-K matrix per node type."""
    rw = [rel_w[k] for k in range(NUM_EDGE_TYPES)]
    rb = [rel_b[k] for k in range(NUM_EDGE_TYPES)]
    tw = [root_w[k] for k in range(NUM_EDGE_TYPES)]
    if HUMAN_NUM <= 1:          # no human<->human edge type exists in the module then
        rw[6] = rw[6] * 0.0; rb[6] = rb[6] * 0.0; tw[6] = tw[6] * 0.0
    if OTHER_ROBOT_NUM <= 1:    # no other<->other edge type exists then
        rw[7] = rw[7] * 0.0; rb[7] = rb[7] * 0.0; tw[7] = tw[7] * 0.0
    # column order of the fused input is [r | sum_o | sum_h] (+ [H] / [O] for non-robot).
    Wr = jnp.concatenate([tw[1] + tw[2], rw[2], rw[1]], axis=0)                         # (96, out)
    br = rb[1] + rb[2]
    Wh = jnp.concatenate([rw[0], rw[4], rw[6], tw[0] + tw[4] + tw[6] - rw[6]], axis=0)  # (128, out)
    bh = rb[0] + rb[4] + rb[6]
    Wo = jnp.concatenate([rw[3], rw[7], rw[5], tw[3] + tw[5] + tw[7] - rw[7]], axis=0)  # (128, out)
    bo = rb[3] + rb[5] + rb[7]
    return Wr, br, Wh, bh, Wo, bo


def pack_params(params):
    """Re-layout the module parameters into one lane-packed (SLAB_ROWS, 128) f32 slab."""
    (wr_w1, wr_b1, wr_w2, wr_b2,
     wh_w1, wh_b1, wh_w2, wh_b2,
     wo_w1, wo_b1, wo_w2, wo_b2,
     c1_rel_w, c1_rel_b, c1_root_w,
     c2_rel_w, c2_rel_b, c2_root_w,
     v_w1, v_b1, v_w2, v_b2) = params

    c1_Wr, c1_br, c1_Wh, c1_bh, c1_Wo, c1_bo = _fuse_conv(c1_rel_w, c1_rel_b, c1_root_w)
    c2_Wr, c2_br, _, _, _, _ = _fuse_conv(c2_rel_w, c2_rel_b, c2_root_w)

    def pad_rows(w, rows):
        return jnp.pad(w, ((0, rows - w.shape[0]), (0, 0)))

    weights = {
        "wr_w1": pad_rows(wr_w1, PAD_IN), "wr_w2": wr_w2,
        "wh_w1": pad_rows(wh_w1, PAD_IN), "wh_w2": wh_w2,
        "wo_w1": pad_rows(wo_w1, PAD_IN), "wo_w2": wo_w2,
        "c1_Wr": c1_Wr, "c1_Wh": c1_Wh, "c1_Wo": c1_Wo,
        "c2_Wr": c2_Wr,
        "v_w1": v_w1,
        "v_w2": jnp.pad(v_w2, ((0, 0), (0, LANE - v_w2.shape[1]))),
    }
    biases = {
        "wr_b1": wr_b1, "wr_b2": wr_b2,
        "wh_b1": wh_b1, "wh_b2": wh_b2,
        "wo_b1": wo_b1, "wo_b2": wo_b2,
        "c1_br": c1_br, "c1_bh": c1_bh, "c1_bo": c1_bo,
        "c2_br": c2_br,
        "v_b1": v_b1,
        "v_b2": jnp.pad(v_b2, ((0, 0), (0, LANE - v_b2.shape[1]))),
    }

    slab = jnp.zeros((SLAB_ROWS, LANE), jnp.float32)
    for name, (r0, c0, k, n) in W_LAYOUT.items():
        w = weights[name].astype(jnp.float32)
        assert w.shape == (k, n), (name, w.shape, (k, n))
        slab = slab.at[r0:r0 + k, c0:c0 + n].set(w)
    for name, (r, n) in B_LAYOUT.items():
        b = jnp.reshape(biases[name].astype(jnp.float32), (1, n))
        slab = slab.at[BIAS_ROW0 + r:BIAS_ROW0 + r + 1, 0:n].set(b)
    return slab


# ------------------------------- wrapper ---------------------------------------------
def _default_batch_tile(B):
    # largest divisor of B that is <= 128 keeps every matmul MXU-sized while VMEM use
    # stays O(tb); split the grid in two for v7x's second TensorCore when it would
    # otherwise be a single step.
    tb = max(d for d in range(1, min(B, 128) + 1) if B % d == 0)
    if B // tb == 1 and B >= 16 and B % 2 == 0:
        tb = B // 2
    return tb


def value_network_forward(state, params, batch_tile=None):
    """state: (B, N_AGENTS, INPUT_DIM) float32 -> value (B, 1) float32."""
    B = state.shape[0]
    tb = _default_batch_tile(B) if batch_tile is None else batch_tile
    assert B % tb == 0

    f32 = jnp.float32
    # slice the state exactly like the PyTorch forward; merge into one lane-dense input:
    # [self(8) | human_0..3 (8 each) | other_0..1 (8 each) | zero-pad to 64]
    self_part = jnp.pad(state[:, 0, :SELF_STATE_DIM].astype(f32),
                        ((0, 0), (0, PAD_IN - SELF_STATE_DIM)))                        # (B, 8)
    agent_parts = [jnp.pad(state[:, a, SELF_STATE_DIM:].astype(f32),
                           ((0, 0), (0, PAD_IN - AGENT_STATE_DIM)))
                   for a in range(N_AGENTS)]                                           # (B, 8) each
    merged = jnp.concatenate([self_part] + agent_parts, axis=-1)                       # (B, 56)
    merged = jnp.pad(merged, ((0, 0), (0, IN_LANES - merged.shape[1])))                # (B, 64)

    slab = pack_params(params)                                                         # (384, 128)

    out = pl.pallas_call(
        value_network_kernel,
        out_shape=jax.ShapeDtypeStruct((B, LANE), jnp.float32),
        grid=(B // tb,),
        in_specs=[
            pl.BlockSpec((tb, IN_LANES), lambda i: (i, 0)),
            pl.BlockSpec((SLAB_ROWS, LANE), lambda i: (0, 0)),
        ],
        out_specs=pl.BlockSpec((tb, LANE), lambda i: (i, 0)),
        compiler_params=pltpu.CompilerParams(dimension_semantics=("parallel",)),
    )(merged, slab)
    # TODO(synk): at very large B the 128-wide lane-dense output over-writes HBM bytes;
    # narrow the pad / transpose values into lanes if B grows to ~10^4+.
    return out[:, :PLANNING_DIMS[-1]]                                                  # (B, 1)


# ------------------------------- parameter init --------------------------------------
def init_params(key):
    keys = iter(jax.random.split(key, 64))

    def lin(fan_in, fan_out):
        bound = 1.0 / float(fan_in) ** 0.5
        w = jax.random.uniform(next(keys), (fan_in, fan_out), jnp.float32, -bound, bound)
        b = jax.random.uniform(next(keys), (1, fan_out), jnp.float32, -bound, bound)
        return w, b

    def conv_stack(in_dim, out_dim):
        bound = 1.0 / float(in_dim) ** 0.5
        rel_w = jax.random.uniform(next(keys), (NUM_EDGE_TYPES, in_dim, out_dim),
                                   jnp.float32, -bound, bound)
        rel_b = jax.random.uniform(next(keys), (NUM_EDGE_TYPES, out_dim),
                                   jnp.float32, -bound, bound)
        root_w = jax.random.uniform(next(keys), (NUM_EDGE_TYPES, in_dim, out_dim),
                                    jnp.float32, -bound, bound)
        return rel_w, rel_b, root_w

    wr_w1, wr_b1 = lin(SELF_STATE_DIM, WR_DIMS[0])
    wr_w2, wr_b2 = lin(WR_DIMS[0], WR_DIMS[1])
    wh_w1, wh_b1 = lin(AGENT_STATE_DIM, WH_DIMS[0])
    wh_w2, wh_b2 = lin(WH_DIMS[0], WH_DIMS[1])
    wo_w1, wo_b1 = lin(AGENT_STATE_DIM, WH_DIMS[0])
    wo_w2, wo_b2 = lin(WH_DIMS[0], WH_DIMS[1])
    c1_rel_w, c1_rel_b, c1_root_w = conv_stack(X_DIM, HIDDEN_CHANNELS)
    c2_rel_w, c2_rel_b, c2_root_w = conv_stack(HIDDEN_CHANNELS, FINAL_STATE_DIM)
    v_w1, v_b1 = lin(FINAL_STATE_DIM, PLANNING_DIMS[0])
    v_w2, v_b2 = lin(PLANNING_DIMS[0], PLANNING_DIMS[1])

    return [
        wr_w1, wr_b1, wr_w2, wr_b2,
        wh_w1, wh_b1, wh_w2, wh_b2,
        wo_w1, wo_b1, wo_w2, wo_b2,
        c1_rel_w, c1_rel_b, c1_root_w,
        c2_rel_w, c2_rel_b, c2_root_w,
        v_w1, v_b1, v_w2, v_b2,
    ]


# --------------------------- pure-JAX reference (unfused) ----------------------------
def reference_forward(state, params):
    (wr_w1, wr_b1, wr_w2, wr_b2,
     wh_w1, wh_b1, wh_w2, wh_b2,
     wo_w1, wo_b1, wo_w2, wo_b2,
     c1_rel_w, c1_rel_b, c1_root_w,
     c2_rel_w, c2_rel_b, c2_root_w,
     v_w1, v_b1, v_w2, v_b2) = params
    relu = jax.nn.relu

    def mm(a, b):
        return jnp.dot(a, b, precision=jax.lax.Precision.HIGHEST)

    self_state = state[:, 0, :SELF_STATE_DIM]
    human_states = state[:, :HUMAN_NUM, SELF_STATE_DIM:]
    other_states = state[:, HUMAN_NUM:, SELF_STATE_DIM:]

    r = relu(mm(relu(mm(self_state, wr_w1) + wr_b1), wr_w2) + wr_b2)      # (B, 32)
    H = relu(mm(relu(mm(human_states, wh_w1) + wh_b1), wh_w2) + wh_b2)    # (B, Hn, 32)
    O = relu(mm(relu(mm(other_states, wo_w1) + wo_b1), wo_w2) + wo_b2)    # (B, On, 32)

    def hetero_layer(r, H, O, rw, rb, tw):
        sum_h = H.sum(axis=1)
        sum_o = O.sum(axis=1)
        r_new = (mm(sum_h, rw[1]) + rb[1] + mm(r, tw[1])
                 + mm(sum_o, rw[2]) + rb[2] + mm(r, tw[2]))
        h_new = ((mm(r, rw[0]) + rb[0])[:, None, :] + mm(H, tw[0])
                 + (mm(sum_o, rw[4]) + rb[4])[:, None, :] + mm(H, tw[4]))
        if HUMAN_NUM > 1:
            h_new = h_new + mm(sum_h[:, None, :] - H, rw[6]) + rb[6] + mm(H, tw[6])
        o_new = ((mm(r, rw[3]) + rb[3])[:, None, :] + mm(O, tw[3])
                 + (mm(sum_h, rw[5]) + rb[5])[:, None, :] + mm(O, tw[5]))
        if OTHER_ROBOT_NUM > 1:
            o_new = o_new + mm(sum_o[:, None, :] - O, rw[7]) + rb[7] + mm(O, tw[7])
        return relu(r_new), relu(h_new), relu(o_new)

    r1, h1, o1 = hetero_layer(r, H, O, c1_rel_w, c1_rel_b, c1_root_w)
    r2, _, _ = hetero_layer(r1, h1, o1, c2_rel_w, c2_rel_b, c2_root_w)
    return mm(relu(mm(r2, v_w1) + v_b1), v_w2) + v_b2


# ------------------------------- main -------------------------------------------------
if __name__ == "__main__":
    key = jax.random.PRNGKey(0)
    k_state, k_params = jax.random.split(key)

    state = jax.random.normal(k_state, (BATCH, N_AGENTS, INPUT_DIM), jnp.float32)
    params = init_params(k_params)

    # TODO(synk): the PyTorch `dropout` forward argument is unused in the reference
    # forward pass, so it is omitted here.
    value = value_network_forward(state, params)
    jax.block_until_ready(value)
    assert value.shape == (BATCH, PLANNING_DIMS[-1])

    ref = reference_forward(state, params)
    assert jnp.allclose(value, ref, rtol=1e-2, atol=1e-2), (value, ref)
    print("KERNEL_OK")
</pallas_src>

<mosaic_0001>
module attributes {stable_mosaic.version = 11 : i64} {
  func.func @value_network_kernel(%arg0: i32, %arg1: memref<2x64xf32, #tpu.memory_space<vmem>>, %arg2: memref<384x128xf32, #tpu.memory_space<vmem>>, %arg3: memref<2x128xf32, #tpu.memory_space<vmem>>) attributes {dimension_semantics = [#tpu.dimension_semantics<parallel>], iteration_bounds = array<i64: 1>, scalar_prefetch = 0 : i64, scratch_operands = 0 : i64, tpu.core_type = #tpu.core_type<tc>, window_params = [{transform_indices = @transform_0, window_bounds = array<i64: 2, 64>}, {pipeline_mode = #tpu.pipeline_mode<synchronous>, transform_indices = @transform_1, window_bounds = array<i64: 384, 128>}, {transform_indices = @transform_2, window_bounds = array<i64: 2, 128>}]} {
    %c368 = arith.constant 368 : index
    %c0 = arith.constant 0 : index
    %0 = vector.load %arg2[%c368, %c0] : memref<384x128xf32, #tpu.memory_space<vmem>>, vector<16x128xf32>
    %c0_0 = arith.constant 0 : index
    %c0_1 = arith.constant 0 : index
    %1 = vector.load %arg1[%c0_0, %c0_1] : memref<2x64xf32, #tpu.memory_space<vmem>>, vector<2x64xf32>
    %2 = vector.extract_strided_slice %1 {offsets = [0, 0], sizes = [2, 8], strides = [1, 1]} : vector<2x64xf32> to vector<2x8xf32>
    %3 = vector.extract_strided_slice %1 {offsets = [0, 8], sizes = [2, 8], strides = [1, 1]} : vector<2x64xf32> to vector<2x8xf32>
    %4 = vector.extract_strided_slice %1 {offsets = [0, 16], sizes = [2, 8], strides = [1, 1]} : vector<2x64xf32> to vector<2x8xf32>
    %5 = vector.extract_strided_slice %1 {offsets = [0, 24], sizes = [2, 8], strides = [1, 1]} : vector<2x64xf32> to vector<2x8xf32>
    %6 = vector.extract_strided_slice %1 {offsets = [0, 32], sizes = [2, 8], strides = [1, 1]} : vector<2x64xf32> to vector<2x8xf32>
    %7 = tpu.concatenate %3, %4, %5, %6 in 0 : vector<2x8xf32>, vector<2x8xf32>, vector<2x8xf32>, vector<2x8xf32> -> vector<8x8xf32>
    %8 = vector.extract_strided_slice %1 {offsets = [0, 40], sizes = [2, 8], strides = [1, 1]} : vector<2x64xf32> to vector<2x8xf32>
    %9 = vector.extract_strided_slice %1 {offsets = [0, 48], sizes = [2, 8], strides = [1, 1]} : vector<2x64xf32> to vector<2x8xf32>
    %10 = tpu.concatenate %8, %9 in 0 : vector<2x8xf32>, vector<2x8xf32> -> vector<4x8xf32>
    %c0_2 = arith.constant 0 : index
    %c0_3 = arith.constant 0 : index
    %11 = vector.load %arg2[%c0_2, %c0_3] : memref<384x128xf32, #tpu.memory_space<vmem>>, vector<8x64xf32>
    %cst = arith.constant dense<0.000000e+00> : vector<2x64xf32>
    %12 = tpu.matmul %2, %11, %cst {dimension_numbers = #tpu.dot_dimension_numbers<[1], [0], [0], [1], [0, 0, 1, 1], [], []>} : vector<2x8xf32>, vector<8x64xf32>, vector<2x64xf32> -> vector<2x64xf32>
    %13 = vector.extract_strided_slice %0 {offsets = [0, 0], sizes = [1, 64], strides = [1, 1]} : vector<16x128xf32> to vector<1x64xf32>
    %14 = vector.broadcast %13 : vector<1x64xf32> to vector<2x64xf32>
    %15 = arith.addf %12, %14 : vector<2x64xf32>
    %cst_4 = arith.constant 0.000000e+00 : f32
    %16 = vector.broadcast %cst_4 : f32 to vector<2x64xf32>
    %17 = arith.maximumf %15, %16 : vector<2x64xf32>
    %c16 = arith.constant 16 : index
    %c0_5 = arith.constant 0 : index
    %18 = vector.load %arg2[%c16, %c0_5] : memref<384x128xf32, #tpu.memory_space<vmem>>, vector<64x32xf32>
    %cst_6 = arith.constant dense<0.000000e+00> : vector<2x32xf32>
    %19 = tpu.matmul %17, %18, %cst_6 {dimension_numbers = #tpu.dot_dimension_numbers<[1], [0], [0], [1], [0, 0, 1, 1], [], []>} : vector<2x64xf32>, vector<64x32xf32>, vector<2x32xf32> -> vector<2x32xf32>
    %20 = vector.extract_strided_slice %0 {offsets = [1, 0], sizes = [1, 32], strides = [1, 1]} : vector<16x128xf32> to vector<1x32xf32>
    %21 = vector.broadcast %20 : vector<1x32xf32> to vector<2x32xf32>
    %22 = arith.addf %19, %21 : vector<2x32xf32>
    %cst_7 = arith.constant 0.000000e+00 : f32
    %23 = vector.broadcast %cst_7 : f32 to vector<2x32xf32>
    %24 = arith.maximumf %22, %23 : vector<2x32xf32>
    %c0_8 = arith.constant 0 : index
    %c64 = arith.constant 64 : index
    %25 = vector.load %arg2[%c0_8, %c64] : memref<384x128xf32, #tpu.memory_space<vmem>>, vector<8x64xf32>
    %cst_9 = arith.constant dense<0.000000e+00> : vector<8x64xf32>
    %26 = tpu.matmul %7, %25, %cst_9 {dimension_numbers = #tpu.dot_dimension_numbers<[1], [0], [0], [1], [0, 0, 1, 1], [], []>} : vector<8x8xf32>, vector<8x64xf32>, vector<8x64xf32> -> vector<8x64xf32>
    %27 = vector.extract_strided_slice %0 {offsets = [2, 0], sizes = [1, 64], strides = [1, 1]} : vector<16x128xf32> to vector<1x64xf32>
    %28 = vector.broadcast %27 : vector<1x64xf32> to vector<8x64xf32>
    %29 = arith.addf %26, %28 : vector<8x64xf32>
    %cst_10 = arith.constant 0.000000e+00 : f32
    %30 = vector.broadcast %cst_10 : f32 to vector<8x64xf32>
    %31 = arith.maximumf %29, %30 : vector<8x64xf32>
    %c16_11 = arith.constant 16 : index
    %c32 = arith.constant 32 : index
    %32 = vector.load %arg2[%c16_11, %c32] : memref<384x128xf32, #tpu.memory_space<vmem>>, vector<64x32xf32>
    %cst_12 = arith.constant dense<0.000000e+00> : vector<8x32xf32>
    %33 = tpu.matmul %31, %32, %cst_12 {dimension_numbers = #tpu.dot_dimension_numbers<[1], [0], [0], [1], [0, 0, 1, 1], [], []>} : vector<8x64xf32>, vector<64x32xf32>, vector<8x32xf32> -> vector<8x32xf32>
    %34 = vector.extract_strided_slice %0 {offsets = [3, 0], sizes = [1, 32], strides = [1, 1]} : vector<16x128xf32> to vector<1x32xf32>
    %35 = vector.broadcast %34 : vector<1x32xf32> to vector<8x32xf32>
    %36 = arith.addf %33, %35 : vector<8x32xf32>
    %cst_13 = arith.constant 0.000000e+00 : f32
    %37 = vector.broadcast %cst_13 : f32 to vector<8x32xf32>
    %38 = arith.maximumf %36, %37 : vector<8x32xf32>
    %c8 = arith.constant 8 : index
    %c0_14 = arith.constant 0 : index
    %39 = vector.load %arg2[%c8, %c0_14] : memref<384x128xf32, #tpu.memory_space<vmem>>, vector<8x64xf32>
    %cst_15 = arith.constant dense<0.000000e+00> : vector<4x64xf32>
    %40 = tpu.matmul %10, %39, %cst_15 {dimension_numbers = #tpu.dot_dimension_numbers<[1], [0], [0], [1], [0, 0, 1, 1], [], []>} : vector<4x8xf32>, vector<8x64xf32>, vector<4x64xf32> -> vector<4x64xf32>
    %41 = vector.extract_strided_slice %0 {offsets = [4, 0], sizes = [1, 64], strides = [1, 1]} : vector<16x128xf32> to vector<1x64xf32>
    %42 = vector.broadcast %41 : vector<1x64xf32> to vector<4x64xf32>
    %43 = arith.addf %40, %42 : vector<4x64xf32>
    %cst_16 = arith.constant 0.000000e+00 : f32
    %44 = vector.broadcast %cst_16 : f32 to vector<4x64xf32>
    %45 = arith.maximumf %43, %44 : vector<4x64xf32>
    %c16_17 = arith.constant 16 : index
    %c64_18 = arith.constant 64 : index
    %46 = vector.load %arg2[%c16_17, %c64_18] : memref<384x128xf32, #tpu.memory_space<vmem>>, vector<64x32xf32>
    %cst_19 = arith.constant dense<0.000000e+00> : vector<4x32xf32>
    %47 = tpu.matmul %45, %46, %cst_19 {dimension_numbers = #tpu.dot_dimension_numbers<[1], [0], [0], [1], [0, 0, 1, 1], [], []>} : vector<4x64xf32>, vector<64x32xf32>, vector<4x32xf32> -> vector<4x32xf32>
    %48 = vector.extract_strided_slice %0 {offsets = [5, 0], sizes = [1, 32], strides = [1, 1]} : vector<16x128xf32> to vector<1x32xf32>
    %49 = vector.broadcast %48 : vector<1x32xf32> to vector<4x32xf32>
    %50 = arith.addf %47, %49 : vector<4x32xf32>
    %cst_20 = arith.constant 0.000000e+00 : f32
    %51 = vector.broadcast %cst_20 : f32 to vector<4x32xf32>
    %52 = arith.maximumf %50, %51 : vector<4x32xf32>
    %53 = vector.extract_strided_slice %38 {offsets = [0, 0], sizes = [2, 32], strides = [1, 1]} : vector<8x32xf32> to vector<2x32xf32>
    %54 = vector.extract_strided_slice %38 {offsets = [2, 0], sizes = [2, 32], strides = [1, 1]} : vector<8x32xf32> to vector<2x32xf32>
    %55 = arith.addf %53, %54 : vector<2x32xf32>
    %56 = vector.extract_strided_slice %38 {offsets = [4, 0], sizes = [2, 32], strides = [1, 1]} : vector<8x32xf32> to vector<2x32xf32>
    %57 = arith.addf %55, %56 : vector<2x32xf32>
    %58 = vector.extract_strided_slice %38 {offsets = [6, 0], sizes = [2, 32], strides = [1, 1]} : vector<8x32xf32> to vector<2x32xf32>
    %59 = arith.addf %57, %58 : vector<2x32xf32>
    %60 = vector.extract_strided_slice %52 {offsets = [0, 0], sizes = [2, 32], strides = [1, 1]} : vector<4x32xf32> to vector<2x32xf32>
    %61 = vector.extract_strided_slice %52 {offsets = [2, 0], sizes = [2, 32], strides = [1, 1]} : vector<4x32xf32> to vector<2x32xf32>
    %62 = arith.addf %60, %61 : vector<2x32xf32>
    %63 = tpu.concatenate %24, %62, %59 in 1 : vector<2x32xf32>, vector<2x32xf32>, vector<2x32xf32> -> vector<2x96xf32>
    %c80 = arith.constant 80 : index
    %c0_21 = arith.constant 0 : index
    %64 = vector.load %arg2[%c80, %c0_21] : memref<384x128xf32, #tpu.memory_space<vmem>>, vector<96x32xf32>
    %cst_22 = arith.constant dense<0.000000e+00> : vector<2x32xf32>
    %65 = tpu.matmul %63, %64, %cst_22 {dimension_numbers = #tpu.dot_dimension_numbers<[1], [0], [0], [1], [0, 0, 1, 1], [], []>} : vector<2x96xf32>, vector<96x32xf32>, vector<2x32xf32> -> vector<2x32xf32>
    %66 = vector.extract_strided_slice %0 {offsets = [6, 0], sizes = [1, 32], strides = [1, 1]} : vector<16x128xf32> to vector<1x32xf32>
    %67 = vector.broadcast %66 : vector<1x32xf32> to vector<2x32xf32>
    %68 = arith.addf %65, %67 : vector<2x32xf32>
    %cst_23 = arith.constant 0.000000e+00 : f32
    %69 = vector.broadcast %cst_23 : f32 to vector<2x32xf32>
    %70 = arith.maximumf %68, %69 : vector<2x32xf32>
    %71 = tpu.concatenate %63, %63, %63, %63 in 0 : vector<2x96xf32>, vector<2x96xf32>, vector<2x96xf32>, vector<2x96xf32> -> vector<8x96xf32>
    %72 = tpu.concatenate %63, %63 in 0 : vector<2x96xf32>, vector<2x96xf32> -> vector<4x96xf32>
    %73 = tpu.concatenate %71, %38 in 1 : vector<8x96xf32>, vector<8x32xf32> -> vector<8x128xf32>
    %c176 = arith.constant 176 : index
    %c0_24 = arith.constant 0 : index
    %74 = vector.load %arg2[%c176, %c0_24] : memref<384x128xf32, #tpu.memory_space<vmem>>, vector<128x32xf32>
    %cst_25 = arith.constant dense<0.000000e+00> : vector<8x32xf32>
    %75 = tpu.matmul %73, %74, %cst_25 {dimension_numbers = #tpu.dot_dimension_numbers<[1], [0], [0], [1], [0, 0, 1, 1], [], []>} : vector<8x128xf32>, vector<128x32xf32>, vector<8x32xf32> -> vector<8x32xf32>
    %76 = vector.extract_strided_slice %0 {offsets = [7, 0], sizes = [1, 32], strides = [1, 1]} : vector<16x128xf32> to vector<1x32xf32>
    %77 = vector.broadcast %76 : vector<1x32xf32> to vector<8x32xf32>
    %78 = arith.addf %75, %77 : vector<8x32xf32>
    %cst_26 = arith.constant 0.000000e+00 : f32
    %79 = vector.broadcast %cst_26 : f32 to vector<8x32xf32>
    %80 = arith.maximumf %78, %79 : vector<8x32xf32>
    %81 = tpu.concatenate %72, %52 in 1 : vector<4x96xf32>, vector<4x32xf32> -> vector<4x128xf32>
    %c176_27 = arith.constant 176 : index
    %c32_28 = arith.constant 32 : index
    %82 = vector.load %arg2[%c176_27, %c32_28] : memref<384x128xf32, #tpu.memory_space<vmem>>, vector<128x32xf32>
    %cst_29 = arith.constant dense<0.000000e+00> : vector<4x32xf32>
    %83 = tpu.matmul %81, %82, %cst_29 {dimension_numbers = #tpu.dot_dimension_numbers<[1], [0], [0], [1], [0, 0, 1, 1], [], []>} : vector<4x128xf32>, vector<128x32xf32>, vector<4x32xf32> -> vector<4x32xf32>
    %84 = vector.extract_strided_slice %0 {offsets = [8, 0], sizes = [1, 32], strides = [1, 1]} : vector<16x128xf32> to vector<1x32xf32>
    %85 = vector.broadcast %84 : vector<1x32xf32> to vector<4x32xf32>
    %86 = arith.addf %83, %85 : vector<4x32xf32>
    %cst_30 = arith.constant 0.000000e+00 : f32
    %87 = vector.broadcast %cst_30 : f32 to vector<4x32xf32>
    %88 = arith.maximumf %86, %87 : vector<4x32xf32>
    %89 = vector.extract_strided_slice %80 {offsets = [0, 0], sizes = [2, 32], strides = [1, 1]} : vector<8x32xf32> to vector<2x32xf32>
    %90 = vector.extract_strided_slice %80 {offsets = [2, 0], sizes = [2, 32], strides = [1, 1]} : vector<8x32xf32> to vector<2x32xf32>
    %91 = arith.addf %89, %90 : vector<2x32xf32>
    %92 = vector.extract_strided_slice %80 {offsets = [4, 0], sizes = [2, 32], strides = [1, 1]} : vector<8x32xf32> to vector<2x32xf32>
    %93 = arith.addf %91, %92 : vector<2x32xf32>
    %94 = vector.extract_strided_slice %80 {offsets = [6, 0], sizes = [2, 32], strides = [1, 1]} : vector<8x32xf32> to vector<2x32xf32>
    %95 = arith.addf %93, %94 : vector<2x32xf32>
    %96 = vector.extract_strided_slice %88 {offsets = [0, 0], sizes = [2, 32], strides = [1, 1]} : vector<4x32xf32> to vector<2x32xf32>
    %97 = vector.extract_strided_slice %88 {offsets = [2, 0], sizes = [2, 32], strides = [1, 1]} : vector<4x32xf32> to vector<2x32xf32>
    %98 = arith.addf %96, %97 : vector<2x32xf32>
    %99 = tpu.concatenate %70, %98, %95 in 1 : vector<2x32xf32>, vector<2x32xf32>, vector<2x32xf32> -> vector<2x96xf32>
    %c80_31 = arith.constant 80 : index
    %c32_32 = arith.constant 32 : index
    %100 = vector.load %arg2[%c80_31, %c32_32] : memref<384x128xf32, #tpu.memory_space<vmem>>, vector<96x32xf32>
    %cst_33 = arith.constant dense<0.000000e+00> : vector<2x32xf32>
    %101 = tpu.matmul %99, %100, %cst_33 {dimension_numbers = #tpu.dot_dimension_numbers<[1], [0], [0], [1], [0, 0, 1, 1], [], []>} : vector<2x96xf32>, vector<96x32xf32>, vector<2x32xf32> -> vector<2x32xf32>
    %102 = vector.extract_strided_slice %0 {offsets = [9, 0], sizes = [1, 32], strides = [1, 1]} : vector<16x128xf32> to vector<1x32xf32>
    %103 = vector.broadcast %102 : vector<1x32xf32> to vector<2x32xf32>
    %104 = arith.addf %101, %103 : vector<2x32xf32>
    %cst_34 = arith.constant 0.000000e+00 : f32
    %105 = vector.broadcast %cst_34 : f32 to vector<2x32xf32>
    %106 = arith.maximumf %104, %105 : vector<2x32xf32>
    %c80_35 = arith.constant 80 : index
    %c64_36 = arith.constant 64 : index
    %107 = vector.load %arg2[%c80_35, %c64_36] : memref<384x128xf32, #tpu.memory_space<vmem>>, vector<32x64xf32>
    %cst_37 = arith.constant dense<0.000000e+00> : vector<2x64xf32>
    %108 = tpu.matmul %106, %107, %cst_37 {dimension_numbers = #tpu.dot_dimension_numbers<[1], [0], [0], [1], [0, 0, 1, 1], [], []>} : vector<2x32xf32>, vector<32x64xf32>, vector<2x64xf32> -> vector<2x64xf32>
    %109 = vector.extract_strided_slice %0 {offsets = [10, 0], sizes = [1, 64], strides = [1, 1]} : vector<16x128xf32> to vector<1x64xf32>
    %110 = vector.broadcast %109 : vector<1x64xf32> to vector<2x64xf32>
    %111 = arith.addf %108, %110 : vector<2x64xf32>
    %cst_38 = arith.constant 0.000000e+00 : f32
    %112 = vector.broadcast %cst_38 : f32 to vector<2x64xf32>
    %113 = arith.maximumf %111, %112 : vector<2x64xf32>
    %c304 = arith.constant 304 : index
    %c0_39 = arith.constant 0 : index
    %114 = vector.load %arg2[%c304, %c0_39] : memref<384x128xf32, #tpu.memory_space<vmem>>, vector<64x128xf32>
    %cst_40 = arith.constant dense<0.000000e+00> : vector<2x128xf32>
    %115 = tpu.matmul %113, %114, %cst_40 {dimension_numbers = #tpu.dot_dimension_numbers<[1], [0], [0], [1], [0, 0, 1, 1], [], []>} : vector<2x64xf32>, vector<64x128xf32>, vector<2x128xf32> -> vector<2x128xf32>
    %116 = vector.extract_strided_slice %0 {offsets = [11, 0], sizes = [1, 128], strides = [1, 1]} : vector<16x128xf32> to vector<1x128xf32>
    %117 = vector.broadcast %116 : vector<1x128xf32> to vector<2x128xf32>
    %118 = arith.addf %115, %117 : vector<2x128xf32>
    %c0_41 = arith.constant 0 : index
    %c0_42 = arith.constant 0 : index
    %119 = vector.load %arg3[%c0_41, %c0_42] : memref<2x128xf32, #tpu.memory_space<vmem>>, vector<2x128xf32>
    tpu.vector_store %arg3[%c0_41, %c0_42], %118 {strides = array<i32>} : memref<2x128xf32, #tpu.memory_space<vmem>>, vector<2x128xf32>,
    return
  }
  func.func @transform_0(%arg0: i32) -> (i32, i32) {
    %c0_i32 = arith.constant 0 : i32
    %c0_i32_0 = arith.constant 0 : i32
    return %arg0, %c0_i32 : i32, i32
  }
  func.func @transform_1(%arg0: i32) -> (i32, i32) {
    %c0_i32 = arith.constant 0 : i32
    %c0_i32_0 = arith.constant 0 : i32
    %c0_i32_1 = arith.constant 0 : i32
    return %c0_i32, %c0_i32_0 : i32, i32
  }
  func.func @transform_2(%arg0: i32) -> (i32, i32) {
    %c0_i32 = arith.constant 0 : i32
    %c0_i32_0 = arith.constant 0 : i32
    return %arg0, %c0_i32 : i32, i32
  }
}

</mosaic_0001>

<bundles_post_ra>
// kernel: tpu_custom_call.1
= control target key start
LH: loop header
LB: loop body
LE: loop exit
PB: predicated region body
PF: predicated region fallthrough
CT: control target
= control target key end

     0   :  { %7 = vsyncpa [#allocation3], 0  ;;  %s1011_s0 = inlined_call_operand.hbm [shape: f32[2,64], index: 0, kind: input, shape index: {}]   ;;  %s1012_s1 = inlined_call_operand.hbm [shape: f32[384,128], index: 1, kind: input, shape index: {}]   ;;  %s1013_s2 = inlined_call_operand.hbm [shape: f32[2,128], index: 2, kind: output, shape index: {}]  }
   0x1   :  { %8 = vsyncpa [#allocation6], 0 }
   0x2   :  { %9 = vsyncpa [#allocation4], 0  ;;  %s15_s11 = sshll.u32 %s1011_s0, 4  ;;  %s906_s12 = smov [#allocation2]   ;;  %s16_s11 = int_to_ptr.hbm [resolvable:$true] %s15_s11 }
   0x3   :  { %s17_s13 = sshll.u32 %s906_s12, 4  ;;  %s25_s16 = sshll.u32 %s1012_s1, 4  ;;  %s18_s13 = int_to_ptr.vmem [resolvable:$true] %s17_s13  ;;  %s26_s16 = int_to_ptr.hbm [resolvable:$true] %s25_s16 }
   0x4   :  { %20 = dma.hbm_to_vmem [thread:$0]  %s16_s11, 32, %s18_s13, [#allocation3]  }
   0x5   :  { %s907_s17 = smov [#allocation5]   ;;  %s908_s19 = smov 128  }
   0x6   :  { %s27_s18 = sshll.u32 %s907_s17, 4  ;;  %s909_s20 = smov 8   ;;  %s28_s18 = int_to_ptr.vmem [resolvable:$true] %s27_s18 }
   0x7   :  { %33 = dma.hbm_to_vmem [thread:$0]  %s26_s16, 6144, %s28_s18, [#allocation6], %s908_s19, %s908_s19, %s909_s20  }
   0x8   :  { %900 = dma.done.wait [#allocation3], 32  }
   0x9   :  { %901 = vsyncadd [#allocation3], 4294967264 }
   0xa   :  { %902 = dma.done.wait [#allocation6], 6144  }
   0xb   :  { %903 = vsyncadd [#allocation6], 4294961152  ;;  %v44_v0 = vld [vmem:[#allocation2] sm:$0x3]  ;;  %v64_v1 = vld [vmem:[#allocation5] sm:$0xff]  ;;  %s910_s0 = smov 120  }
   0xc   :  { %v46_v2 = vrot.slane %v44_v0, 6  ;;  %v54_v3 = vrot.slane %v44_v0, 2  ;;  %84 = vmatpush.msra.mxu2 %v64_v1  ;;  %s911_s1 = smov 104   ;;  %v50_v4 = vrot.slane %v44_v0, 4  ;;  %s912_s21 = smov 112   ;;  %vm66_vm0 = vcmask 64512  }
   0xd   :  { %s913_s22 = smov 64   ;;  %v96_v5 = vld [vmem:[#allocation5 + $0x40] sm:$0xff]  ;;  %v97_v6 = vld [vmem:[#allocation5 + $0x48] sm:$0xff]  ;;  %686 = vmatmul.msk.f32.vlgmr.msra.gmra.mxu2 %vm66_vm0, %v44_v0  ;;  %s914_s23 = smov 96   ;;  %vm58_vm1 = vcmask 1041408   ;;  %vm60_vm2 = vcmask 1043456  }
   0xe   :  { %47 = vrot.lane.b32.xlu0 %v46_v2, %s910_s0  ;;  %55 = vrot.lane.b32.xlu1 %v54_v3, %s911_s1  ;;  %v708_v7 = vpack.i.bf16 %v96_v5, %v97_v6  ;;  %vm62_vm3 = vcmask 1045504   ;;  %s915_s24 = smov 88   ;;  %v94_v15 = vld [vmem:[#allocation5 + $0x30] sm:$0xff]  ;;  %v95_v16 = vld [vmem:[#allocation5 + $0x38] sm:$0xff]  ;;  %v212_v17 = vld [vmem:[#allocation5 + $0x8] sm:$0xff]  ;;  %vm99_vm4 = vcmask 523264  }
   0xf   :  { %111 = vmatpush.msra.mxu1 %v97_v6  ;;  %v723_v18 = vpack.i.bf16 %v94_v15, %v95_v16  ;;  %234 = vmatpush.msra.mxu0 %v212_v17  ;;  %v92_v19 = vld [vmem:[#allocation5 + $0x20] sm:$0xff]  ;;  %v93_v20 = vld [vmem:[#allocation5 + $0x28] sm:$0xff]  ;;  %v90_v22 = vld [vmem:[#allocation5 + $0x10] sm:$0xff]  ;;  %s916_s25 = smov 32   ;;  %vm311_vm5 = vcmask 261120   ;;  %vm327_vm6 = vcmask 785408  }
  0x10   :  { %v728_v21 = vpack.i.bf16 %v92_v19, %v93_v20  ;;  %v91_v23 = vld [vmem:[#allocation5 + $0x18] sm:$0xff]  ;;  %v954_v30 = vld [vmem:[#allocation5 + $0x170] sm:$0xff]  ;;  %v375_v58 = vld [vmem:[#allocation5 + $0x100] sm:$0xff]  ;;  %s917_s26 = smov [#allocation7]   ;;  %s675_s30 = sshll.u32 %s1013_s2, 4  ;;  %s676_s30 = int_to_ptr.hbm [resolvable:$true] %s675_s30 }
  0x11   :  { %112 = vmatpush.msra.mxu1 %v96_v5  ;;  %v738_v24 = vpack.i.bf16 %v90_v22, %v91_v23  ;;  %v65_v32 = vperm.slane %v954_v30, 0  ;;  %v377_v56 = vld [vmem:[#allocation5 + $0x110] sm:$0xff]  ;;  %v378_v57 = vld [vmem:[#allocation5 + $0x118] sm:$0xff]  ;;  %v376_v60 = vld [vmem:[#allocation5 + $0x108] sm:$0xff]  ;;  %s673_s27 = sshll.u32 %s917_s26, 4  ;;  %s674_s27 = int_to_ptr.vmem [resolvable:$true] %s673_s27 }
  0x12   :  { %v753_v59 = vpack.i.bf16 %v377_v56, %v378_v57  ;;  %v758_v61 = vpack.i.bf16 %v375_v58, %v376_v60  ;;  %v379_v62 = vld [vmem:[#allocation5 + $0x120] sm:$0xff]  ;;  %v380_v63 = vld [vmem:[#allocation5 + $0x128] sm:$0xff]  ;;  %v369_v3 = vld [vmem:[#allocation5 + $0xd0] sm:$0xff] }
  0x13   :  { %113 = vmatpush.msra.mxu1 %v95_v16  ;;  %v748_v2 = vpack.i.bf16 %v379_v62, %v380_v63  ;;  %v374_v16 = vld [vmem:[#allocation5 + $0xf8] sm:$0xff] }
  0x15   :  { %114 = vmatpush.msra.mxu1 %v94_v15  ;;  %v373_v15 = vld [vmem:[#allocation5 + $0xf0] sm:$0xff] }
  0x16   :  { %51 = vrot.lane.b32.xlu0 %v50_v4, %s912_s21  ;;  %129 = vrot.lane.b32.xlu1 %v64_v1, %s913_s22  ;;  %v372_v1 = vld [vmem:[#allocation5 + $0xe8] sm:$0xff]  ;;  %v370_v4 = vld [vmem:[#allocation5 + $0xd8] sm:$0xff]  ;;  %v763_v17 = vpack.i.bf16 %v373_v15, %v374_v16 }
  0x17   :  { %115 = vmatpush.msra.mxu1 %v93_v20  ;;  %v773_v6 = vpack.i.bf16 %v369_v3, %v370_v4 }
  0x19   :  { %116 = vmatpush.msra.mxu1 %v92_v19  ;;  %v368_v19 = vld [vmem:[#allocation5 + $0xc8] sm:$0xff] }
  0x1b   :  { %117 = vmatpush.msra.mxu1 %v91_v23 }
  0x1d   :  { %118 = vmatpush.msra.mxu1 %v90_v22  ;;  %v365_v22 = vld [vmem:[#allocation5 + $0xb0] sm:$0xff] }
  0x1e   :  { %709 = vrot.lane.b32.xlu0 %v708_v7, %s914_s23  ;;  %714 = vrot.lane.b32.xlu1 %v708_v7, %s913_s22  ;;  %v124_v7 = vperm.slane %v954_v30, 2 }
  0x1f   :  { %382 = vmatpush.msrb.mxu1 %v380_v63  ;;  %v324_v63 = vld [vmem:[#allocation5 + $0xa0] sm:$0xff] }
  0x21   :  { %383 = vmatpush.msrb.mxu1 %v379_v62  ;;  %v325_v62 = vld [vmem:[#allocation5 + $0xa8] sm:$0xff] }
  0x22   :  { %335 = vmatpush.msrb.mxu0 %v325_v62 }
  0x23   :  { %384 = vmatpush.msrb.mxu1 %v378_v57 }
  0x24   :  { %336 = vmatpush.msrb.mxu0 %v324_v63 }
  0x25   :  { %385 = vmatpush.msrb.mxu1 %v377_v56 }
  0x26   :  { %724 = vrot.lane.b32.xlu0 %v723_v18, %s913_s22  ;;  %729 = vrot.lane.b32.xlu1 %v728_v21, %s914_s23 }
  0x27   :  { %386 = vmatpush.msrb.mxu1 %v376_v60 }
  0x29   :  { %387 = vmatpush.msrb.mxu1 %v375_v58 }
  0x2b   :  { %388 = vmatpush.msrb.mxu1 %v374_v16 }
  0x2d   :  { %389 = vmatpush.msrb.mxu1 %v373_v15 }
  0x2e   :  { %739 = vrot.lane.b32.xlu0 %v738_v24, %s914_s23  ;;  %744 = vrot.lane.b32.xlu1 %v738_v24, %s913_s22 }
  0x2f   :  { %390 = vmatpush.msrb.mxu1 %v372_v1 }
  0x36   :  { %754 = vrot.lane.b32.xlu0 %v753_v59, %s914_s23  ;;  %759 = vrot.lane.b32.xlu1 %v758_v61, %s914_s23 }
  0x3e   :  { %774 = vrot.lane.b32.xlu1 %v773_v6, %s914_s23 }
  0x80   :  { %v48_v8 = vpop.permute.xlu0 %47  ;;  %v56_v9 = vpop.permute.xlu1 %55 }
  0x81   :  { %v59_v10 = vsel %vm58_vm1, %v44_v0, %v48_v8  ;;  %v371_v0 = vld [vmem:[#allocation5 + $0xe0] sm:$0xff]  ;;  %v213_v8 = vperm.slane %v954_v30, 4 }
  0x82   :  { %v768_v5 = vpack.i.bf16 %v371_v0, %v372_v1  ;;  %391 = vmatpush.msrb.mxu1 %v371_v0  ;;  %v323_v0 = vld [vmem:[#allocation5 + $0x98] sm:$0xff]  ;;  %v788_v1 = vpack.i.bf16 %v324_v63, %v325_v62 }
  0x83   :  { %337 = vmatpush.msrb.mxu0 %v323_v0 }
  0x84   :  { %769 = vrot.lane.b32.xlu0 %v768_v5, %s914_s23  ;;  %392 = vmatpush.msrb.mxu1 %v370_v4  ;;  %v320_v4 = vld [vmem:[#allocation5 + $0x80] sm:$0xff] }
  0x86   :  { %393 = vmatpush.msrb.mxu1 %v369_v3  ;;  %v321_v3 = vld [vmem:[#allocation5 + $0x88] sm:$0xff] }
  0x87   :  { %v798_v6 = vpack.i.bf16 %v320_v4, %v321_v3 }
  0x88   :  { %v52_v11 = vpop.permute.xlu0 %51  ;;  %v130_v12 = vpop.permute.xlu1 %129  ;;  %394 = vmatpush.msrb.mxu1 %v368_v19 }
  0x89   :  { %v61_v13 = vsel %vm60_vm2, %v59_v10, %v52_v11  ;;  %149 = vmatpush.msrb.mxu2 %v130_v12 }
  0x8a   :  { %v63_v14 = vsel %vm62_vm3, %v61_v13, %v56_v9 }
  0x8b   :  { %126 = vrot.lane.b32.xlu2 %v63_v14, %s910_s0 }
  0x90   :  { %v710_v26 = vpop.permute.xlu0 %709  ;;  %v86_v31 = vpop.f32.mrf.mxu2 }
  0x91   :  { %v711_v27 = vunpack.i.l.bf16 %v710_v26  ;;  %v712_v29 = vunpack.i.h.bf16 %v710_v26  ;;  %v87_v33 = vadd.f32 %v86_v31, %v65_v32  ;;  %v715_v38 = vpop.permute.xlu1 %714  ;;  %v155_v32 = vperm.slane %v954_v30, 3 }
  0x92   :  { %v717_v39 = vunpack.i.h.bf16 %v715_v38  ;;  %v716_v40 = vunpack.i.l.bf16 %v715_v38 }
  0x93   :  { %215 = vrot.lane.b32.xlu2 %v59_v10, %s915_s24  ;;  %199 = vmatpush.msra.mxu3 %v711_v27  ;;  %v89_v34 = vmax.f32 %v87_v33, 0.0 }
  0x94   :  { %276 = vmatpush.msra.mxu2 %v716_v40 }
  0x95   :  { %200 = vmatpush.msra.mxu3 %v712_v29  ;;  %687 = vmatmul.msk.f32.vlgmr.msra.gmra.mxu1 %vm99_vm4, %v89_v34 }
  0x96   :  { %277 = vmatpush.msra.mxu2 %v717_v39 }
  0x98   :  { %v725_v41 = vpop.permute.xlu0 %724 }
  0x99   :  { %v726_v42 = vunpack.i.l.bf16 %v725_v41  ;;  %v727_v44 = vunpack.i.h.bf16 %v725_v41  ;;  %v730_v46 = vpop.permute.xlu1 %729 }
  0x9a   :  { %v731_v47 = vunpack.i.l.bf16 %v730_v46  ;;  %v732_v49 = vunpack.i.h.bf16 %v730_v46 }
  0x9b   :  { %719 = vrot.lane.b32.xlu2 %v723_v18, %s914_s23  ;;  %278 = vmatpush.msra.mxu2 %v726_v42  ;;  %v367_v18 = vld [vmem:[#allocation5 + $0xc0] sm:$0xff] }
  0x9c   :  { %v778_v20 = vpack.i.bf16 %v367_v18, %v368_v19  ;;  %395 = vmatpush.msrb.mxu1 %v367_v18  ;;  %v98_v18 = vperm.slane %v954_v30, 1 }
  0x9d   :  { %279 = vmatpush.msra.mxu2 %v727_v44 }
  0xa0   :  { %v740_v50 = vpop.permute.xlu0 %739 }
  0xa1   :  { %v741_v51 = vunpack.i.l.bf16 %v740_v50  ;;  %v742_v52 = vunpack.i.h.bf16 %v740_v50  ;;  %v745_v53 = vpop.permute.xlu1 %744 }
  0xa2   :  { %v746_v54 = vunpack.i.l.bf16 %v745_v53  ;;  %v747_v55 = vunpack.i.h.bf16 %v745_v53 }
  0xa3   :  { %734 = vrot.lane.b32.xlu2 %v728_v21, %s913_s22  ;;  %v366_v21 = vld [vmem:[#allocation5 + $0xb8] sm:$0xff] }
  0xa4   :  { %396 = vmatpush.msrb.mxu1 %v366_v21 }
  0xa6   :  { %397 = vmatpush.msrb.mxu1 %v365_v22 }
  0xa8   :  { %v755_v24 = vpop.permute.xlu0 %754 }
  0xa9   :  { %v756_v27 = vunpack.i.l.bf16 %v755_v24  ;;  %v757_v29 = vunpack.i.h.bf16 %v755_v24 }
  0xab   :  { %749 = vrot.lane.b32.xlu2 %v748_v2, %s914_s23  ;;  %v322_v2 = vld [vmem:[#allocation5 + $0x90] sm:$0xff] }
  0xac   :  { %v793_v5 = vpack.i.bf16 %v322_v2, %v323_v0  ;;  %338 = vmatpush.msrb.mxu0 %v322_v2 }
  0xae   :  { %339 = vmatpush.msrb.mxu0 %v321_v3 }
  0xb0   :  { %340 = vmatpush.msrb.mxu0 %v320_v4 }
  0xb3   :  { %764 = vrot.lane.b32.xlu2 %v763_v17, %s914_s23 }
  0xbb   :  { %779 = vrot.lane.b32.xlu2 %v778_v20, %s914_s23 }
  0xe5   :  { %v127_v25 = vpop.permute.xlu2 %126 }
  0xe6   :  { %688 = vmatmul.msk.f32.vlgmr.msrb.gmra.mxu2 %vm66_vm0, %v127_v25 }
  0xed   :  { %v216_v28 = vpop.permute.xlu2 %215 }
  0xee   :  { %690 = vmatmul.msk.f32.vlgmr.msra.gmra.mxu0 %vm66_vm0, %v216_v28  ;;  %v760_v28 = vpop.permute.xlu1 %759 }
  0xef   :  { %v761_v31 = vunpack.i.l.bf16 %v760_v28  ;;  %v762_v34 = vunpack.i.h.bf16 %v760_v28 }
  0xf5   :  { %v720_v35 = vpop.permute.xlu2 %719 }
  0xf6   :  { %v721_v36 = vunpack.i.l.bf16 %v720_v35  ;;  %v722_v37 = vunpack.i.h.bf16 %v720_v35  ;;  %v240_v35 = vperm.slane %v954_v30, 5  ;;  %v770_v39 = vpop.permute.xlu0 %769 }
  0xf7   :  { %v771_v44 = vunpack.i.l.bf16 %v770_v39  ;;  %v772_v56 = vunpack.i.h.bf16 %v770_v39 }
  0xf8   :  { %201 = vmatpush.msra.mxu3 %v721_v36 }
  0xfa   :  { %202 = vmatpush.msra.mxu3 %v722_v37 }
  0xfc   :  { %203 = vmatpush.msra.mxu3 %v731_v47 }
  0xfd   :  { %v735_v43 = vpop.permute.xlu2 %734 }
  0xfe   :  { %v736_v45 = vunpack.i.l.bf16 %v735_v43  ;;  %v737_v48 = vunpack.i.h.bf16 %v735_v43  ;;  %204 = vmatpush.msra.mxu3 %v732_v49 }
 0x100   :  { %280 = vmatpush.msra.mxu2 %v736_v45  ;;  %205 = vmatpush.msra.mxu3 %v741_v51 }
 0x102   :  { %281 = vmatpush.msra.mxu2 %v737_v48  ;;  %206 = vmatpush.msra.mxu3 %v742_v52 }
 0x104   :  { %282 = vmatpush.msra.mxu2 %v746_v54 }
 0x105   :  { %v750_v23 = vpop.permute.xlu2 %749 }
 0x106   :  { %283 = vmatpush.msra.mxu2 %v747_v55  ;;  %v751_v25 = vunpack.i.l.bf16 %v750_v23  ;;  %v752_v26 = vunpack.i.h.bf16 %v750_v23  ;;  %v775_v55 = vpop.permute.xlu1 %774 }
 0x107   :  { %v776_v57 = vunpack.i.l.bf16 %v775_v55  ;;  %v777_v58 = vunpack.i.h.bf16 %v775_v55 }
 0x108   :  { %472 = vmatpush.msrb.mxu3 %v751_v25 }
 0x10a   :  { %473 = vmatpush.msrb.mxu3 %v752_v26 }
 0x10c   :  { %474 = vmatpush.msrb.mxu3 %v756_v27 }
 0x10d   :  { %v765_v33 = vpop.permute.xlu2 %764 }
 0x10e   :  { %475 = vmatpush.msrb.mxu3 %v757_v29  ;;  %v766_v37 = vunpack.i.l.bf16 %v765_v33  ;;  %v767_v41 = vunpack.i.h.bf16 %v765_v33 }
 0x110   :  { %476 = vmatpush.msrb.mxu3 %v761_v31 }
 0x112   :  { %477 = vmatpush.msrb.mxu3 %v762_v34  ;;  %v120_v19 = vpop.f32.mrf.mxu1 }
 0x113   :  { %v121_v20 = vadd.f32 %v120_v19, %v98_v18 }
 0x114   :  { %478 = vmatpush.msrb.mxu3 %v766_v37 }
 0x115   :  { %v780_v59 = vpop.permute.xlu2 %779 }
 0x116   :  { %479 = vmatpush.msrb.mxu3 %v767_v41  ;;  %v781_v60 = vunpack.i.l.bf16 %v780_v59  ;;  %v782_v61 = vunpack.i.h.bf16 %v780_v59  ;;  %v381_v41 = vperm.slane %v954_v30, 7 }
 0x118   :  { %480 = vmatpush.msrb.mxu3 %v771_v44 }
 0x11a   :  { %481 = vmatpush.msrb.mxu3 %v772_v56 }
 0x11c   :  { %482 = vmatpush.msrb.mxu3 %v776_v57 }
 0x11e   :  { %483 = vmatpush.msrb.mxu3 %v777_v58 }
 0x120   :  { %484 = vmatpush.msrb.mxu3 %v781_v60 }
 0x122   :  { %485 = vmatpush.msrb.mxu3 %v782_v61 }
 0x169   :  { %v151_v9 = vpop.f32.mrf.mxu2 }
 0x16a   :  { %v152_v10 = vadd.f32 %v151_v9, %v124_v7  ;;  %v319_v7 = vld [vmem:[#allocation5 + $0x78] sm:$0xff] }
 0x16b   :  { %v236_v11 = vpop.f32.mrf.mxu0  ;;  %341 = vmatpush.msrb.mxu0 %v319_v7 }
 0x16c   :  { %v154_v12 = vmax.f32 %v152_v10, 0.0  ;;  %v237_v13 = vadd.f32 %v236_v11, %v213_v8  ;;  %v318_v8 = vld [vmem:[#allocation5 + $0x70] sm:$0xff]  ;;  %v317_v10 = vld [vmem:[#allocation5 + $0x68] sm:$0xff]  ;;  %v316_v11 = vld [vmem:[#allocation5 + $0x60] sm:$0xff] }
 0x16d   :  { %v803_v9 = vpack.i.bf16 %v318_v8, %v319_v7  ;;  %342 = vmatpush.msrb.mxu0 %v318_v8 }
 0x16e   :  { %v239_v14 = vmax.f32 %v237_v13, 0.0  ;;  %689 = vmatmul.msk.f32.vlgmr.msra.gmra.mxu3 %vm99_vm4, %v154_v12  ;;  %v808_v12 = vpack.i.bf16 %v316_v11, %v317_v10  ;;  %v315_v13 = vld [vmem:[#allocation5 + $0x58] sm:$0xff] }
 0x16f   :  { %343 = vmatpush.msrb.mxu0 %v317_v10 }
 0x170   :  { %691 = vmatmul.msk.f32.vlgmr.msra.gmra.mxu2 %vm99_vm4, %v239_v14  ;;  %v314_v14 = vld [vmem:[#allocation5 + $0x50] sm:$0xff] }
 0x171   :  { %344 = vmatpush.msrb.mxu0 %v316_v11  ;;  %v813_v15 = vpack.i.bf16 %v314_v14, %v315_v13 }
 0x173   :  { %345 = vmatpush.msrb.mxu0 %v315_v13 }
 0x175   :  { %346 = vmatpush.msrb.mxu0 %v314_v14 }
 0x1f1   :  { %v208_v36 = vpop.f32.mrf.mxu3 }
 0x1f2   :  { %v209_v38 = vadd.f32 %v208_v36, %v155_v32 }
 0x1f3   :  { %v285_v40 = vpop.f32.mrf.mxu2 }
 0x1f4   :  { %v211_v42 = vmax.f32 %v209_v38, 0.0  ;;  %v286_v43 = vadd.f32 %v285_v40, %v240_v35 }
 0x1f6   :  { %v288_v45 = vmax.f32 %v286_v43, 0.0  ;;  %v290_v46 = vrot.slane %v211_v42, 2  ;;  %v293_v50 = vrot.slane %v211_v42, 4  ;;  %v296_v53 = vrot.slane %v211_v42, 6 }
 0x1f8   :  { %v300_v47 = vrot.slane %v288_v45, 2  ;;  %v783_v48 = vpack.i.bf16 %v288_v45, %v366_v21  ;;  %v292_v49 = vadd.f32 %v290_v46, %v211_v42  ;;  %v123_v21 = vmax.f32 %v121_v20, 0.0 }
 0x1fa   :  { %784 = vrot.lane.b32.xlu2 %v783_v48, %s914_s23  ;;  %v302_v51 = vadd.f32 %v300_v47, %v288_v45  ;;  %v295_v52 = vadd.f32 %v293_v50, %v292_v49 }
 0x1fc   :  { %304 = vrot.lane.b32.xlu0 %v302_v51, %s916_s25  ;;  %v298_v54 = vadd.f32 %v296_v53, %v295_v52 }
 0x1fe   :  { %308 = vrot.lane.b32.xlu1 %v298_v54, %s913_s22 }
 0x202   :  { %789 = vrot.lane.b32.xlu2 %v788_v1, %s914_s23 }
 0x204   :  { %424 = vrot.lane.b32.xlu0 %v365_v22, %s914_s23 }
 0x206   :  { %361 = vrot.lane.b32.xlu1 %v211_v42, %s914_s23  ;;  %v993_v42 = vld [vmem:[#allocation5 + $0x178] sm:$0xff] }
 0x207   :  { %v407_v45 = vperm.slane %v993_v42, 0 }
 0x20a   :  { %804 = vrot.lane.b32.xlu2 %v803_v9, %s914_s23 }
 0x20c   :  { %794 = vrot.lane.b32.xlu0 %v793_v5, %s914_s23 }
 0x20e   :  { %799 = vrot.lane.b32.xlu1 %v798_v6, %s914_s23 }
 0x214   :  { %809 = vrot.lane.b32.xlu0 %v808_v12, %s914_s23 }
 0x216   :  { %814 = vrot.lane.b32.xlu1 %v813_v15, %s914_s23 }
 0x21e   :  { %819 = vrot.lane.b32.xlu1 %v808_v12, %s913_s22 }
 0x254   :  { %v785_v16 = vpop.permute.xlu2 %784 }
 0x255   :  { %v786_v17 = vunpack.i.l.bf16 %v785_v16  ;;  %v787_v29 = vunpack.i.h.bf16 %v785_v16  ;;  %v326_v16 = vperm.slane %v954_v30, 6  ;;  %v517_v30 = vperm.slane %v993_v42, 1 }
 0x257   :  { %486 = vmatpush.msrb.mxu3 %v786_v17 }
 0x25c   :  { %v790_v38 = vpop.permute.xlu2 %789 }
 0x25d   :  { %v792_v39 = vunpack.i.h.bf16 %v790_v38  ;;  %v791_v40 = vunpack.i.l.bf16 %v790_v38 }
 0x25f   :  { %573 = vmatpush.msrb.mxu2 %v791_v40 }
 0x261   :  { %574 = vmatpush.msrb.mxu2 %v792_v39  ;;  %v643_v39 = vperm.slane %v993_v42, 3 }
 0x264   :  { %v805_v0 = vpop.permute.xlu2 %804 }
 0x265   :  { %v806_v1 = vunpack.i.l.bf16 %v805_v0  ;;  %v807_v3 = vunpack.i.h.bf16 %v805_v0 }
 0x26e   :  { %v305_v22 = vpop.permute.xlu0 %304 }
 0x26f   :  { %v312_v23 = vsel %vm311_vm5, %v123_v21, %v305_v22 }
 0x270   :  { %v309_v24 = vpop.permute.xlu1 %308 }
 0x271   :  { %v313_v25 = vsel %vm99_vm4, %v312_v23, %v309_v24  ;;  %v642_v23 = vld [vmem:[#allocation5 + $0x168] sm:$0xff]  ;;  %v641_v24 = vld [vmem:[#allocation5 + $0x160] sm:$0xff] }
 0x272   :  { %v352_v26 = vrot.slane %v313_v25, 6  ;;  %v354_v27 = vrot.slane %v313_v25, 4  ;;  %692 = vmatmul.msk.f32.vlgmr.msrb.gmra.mxu0 %vm327_vm6, %v313_v25  ;;  %v356_v32 = vrot.slane %v313_v25, 2 }
 0x274   :  { %v358_v28 = vsel %vm58_vm1, %v313_v25, %v352_v26  ;;  %v640_v25 = vld [vmem:[#allocation5 + $0x158] sm:$0xff]  ;;  %v639_v26 = vld [vmem:[#allocation5 + $0x150] sm:$0xff] }
 0x275   :  { %v359_v31 = vsel %vm60_vm2, %v358_v28, %v354_v27  ;;  %v406_v34 = vsel %vm327_vm6, %v358_v28, %v787_v29  ;;  %v638_v27 = vld [vmem:[#allocation5 + $0x148] sm:$0xff] }
 0x276   :  { %v425_v33 = vpop.permute.xlu0 %424  ;;  %v360_v36 = vsel %vm62_vm3, %v359_v31, %v356_v32  ;;  %v637_v32 = vld [vmem:[#allocation5 + $0x140] sm:$0xff] }
 0x277   :  { %487 = vmatpush.msrb.mxu3 %v425_v33  ;;  %v636_v33 = vld [vmem:[#allocation5 + $0x138] sm:$0xff] }
 0x278   :  { %v362_v35 = vpop.permute.xlu1 %361  ;;  %488 = vmatmul.f32.vlgmr.msrb.gmra.mxu3 %v406_v34  ;;  %v635_v34 = vld [vmem:[#allocation5 + $0x130] sm:$0xff] }
 0x279   :  { %v364_v37 = vsel %vm327_vm6, %v360_v36, %v362_v35  ;;  %v594_v35 = vperm.slane %v993_v42, 2 }
 0x27a   :  { %398 = vmatmul.f32.vlgmr.msrb.gmra.mxu1 %v364_v37 }
 0x27e   :  { %v795_v58 = vpop.permute.xlu0 %794 }
 0x27f   :  { %v797_v60 = vunpack.i.h.bf16 %v795_v58  ;;  %v796_v61 = vunpack.i.l.bf16 %v795_v58 }
 0x280   :  { %v800_v59 = vpop.permute.xlu1 %799 }
 0x281   :  { %575 = vmatpush.msrb.mxu2 %v796_v61  ;;  %v801_v62 = vunpack.i.l.bf16 %v800_v59  ;;  %v802_v63 = vunpack.i.h.bf16 %v800_v59 }
 0x283   :  { %576 = vmatpush.msrb.mxu2 %v797_v60 }
 0x285   :  { %577 = vmatpush.msrb.mxu2 %v801_v62 }
 0x286   :  { %v810_v2 = vpop.permute.xlu0 %809 }
 0x287   :  { %578 = vmatpush.msrb.mxu2 %v802_v63  ;;  %v811_v4 = vunpack.i.l.bf16 %v810_v2  ;;  %v812_v6 = vunpack.i.h.bf16 %v810_v2 }
 0x288   :  { %v815_v5 = vpop.permute.xlu1 %814 }
 0x289   :  { %579 = vmatpush.msrb.mxu2 %v806_v1  ;;  %v816_v7 = vunpack.i.l.bf16 %v815_v5  ;;  %v817_v8 = vunpack.i.h.bf16 %v815_v5 }
 0x28b   :  { %580 = vmatpush.msrb.mxu2 %v807_v3 }
 0x28d   :  { %581 = vmatpush.msrb.mxu2 %v811_v4 }
 0x28f   :  { %582 = vmatpush.msrb.mxu2 %v812_v6 }
 0x290   :  { %v820_v9 = vpop.permute.xlu1 %819 }
 0x291   :  { %583 = vmatpush.msrb.mxu2 %v816_v7  ;;  %v822_v10 = vunpack.i.h.bf16 %v820_v9  ;;  %v821_v11 = vunpack.i.l.bf16 %v820_v9 }
 0x293   :  { %584 = vmatpush.msrb.mxu2 %v817_v8  ;;  %626 = vmatpush.msra.mxu0 %v821_v11 }
 0x295   :  { %627 = vmatpush.msra.mxu0 %v822_v10 }
 0x2ef   :  { %v348_v17 = vpop.f32.mrf.mxu0 }
 0x2f0   :  { %v349_v18 = vadd.f32 %v348_v17, %v326_v16 }
 0x2f2   :  { %v351_v19 = vmax.f32 %v349_v18, 0.0 }
 0x2f7   :  { %v399_v43 = vpop.f32.mrf.mxu1 }
 0x2f8   :  { %v400_v44 = vadd.f32 %v399_v43, %v381_v41 }
 0x2fa   :  { %v402_v46 = vmax.f32 %v400_v44, 0.0 }
 0x2fb   :  { %v489_v47 = vpop.f32.mrf.mxu3 }
 0x2fc   :  { %v494_v48 = vrot.slane %v402_v46, 2  ;;  %v490_v49 = vadd.f32 %v489_v47, %v407_v45  ;;  %v497_v52 = vrot.slane %v402_v46, 4  ;;  %v500_v55 = vrot.slane %v402_v46, 6 }
 0x2fe   :  { %v492_v50 = vmax.f32 %v490_v49, 0.0  ;;  %v496_v51 = vadd.f32 %v494_v48, %v402_v46 }
 0x300   :  { %v504_v53 = vrot.slane %v492_v50, 2  ;;  %v499_v54 = vadd.f32 %v497_v52, %v496_v51 }
 0x302   :  { %v506_v56 = vadd.f32 %v504_v53, %v492_v50  ;;  %v502_v57 = vadd.f32 %v500_v55, %v499_v54 }
 0x304   :  { %508 = vrot.lane.b32.xlu2 %v506_v56, %s916_s25  ;;  %512 = vrot.lane.b32.xlu0 %v502_v57, %s913_s22 }
 0x30c   :  { %824 = vrot.lane.b32.xlu2 %v813_v15, %s913_s22 }
 0x35e   :  { %v509_v12 = vpop.permute.xlu2 %508 }
 0x35f   :  { %v515_v20 = vsel %vm311_vm5, %v351_v19, %v509_v12 }
 0x366   :  { %v825_v13 = vpop.permute.xlu2 %824 }
 0x367   :  { %v827_v14 = vunpack.i.h.bf16 %v825_v13  ;;  %v826_v15 = vunpack.i.l.bf16 %v825_v13 }
 0x369   :  { %628 = vmatpush.msra.mxu0 %v826_v15 }
 0x36b   :  { %629 = vmatpush.msra.mxu0 %v827_v14 }
 0x36d   :  { %655 = vmatpush.msrb.mxu0 %v642_v23 }
 0x36f   :  { %656 = vmatpush.msrb.mxu0 %v641_v24 }
 0x371   :  { %657 = vmatpush.msrb.mxu0 %v640_v25 }
 0x373   :  { %658 = vmatpush.msrb.mxu0 %v639_v26 }
 0x375   :  { %659 = vmatpush.msrb.mxu0 %v638_v27 }
 0x376   :  { %v513_v21 = vpop.permute.xlu0 %512 }
 0x377   :  { %v516_v22 = vsel %vm99_vm4, %v515_v20, %v513_v21  ;;  %660 = vmatpush.msrb.mxu0 %v637_v32 }
 0x378   :  { %693 = vmatmul.msk.f32.vlgmr.msrb.gmra.mxu2 %vm327_vm6, %v516_v22 }
 0x379   :  { %661 = vmatpush.msrb.mxu0 %v636_v33 }
 0x37b   :  { %662 = vmatpush.msrb.mxu0 %v635_v34 }
 0x3fb   :  { %v586_v28 = vpop.f32.mrf.mxu2 }
 0x3fc   :  { %v587_v29 = vadd.f32 %v586_v28, %v517_v30 }
 0x3fe   :  { %v589_v31 = vmax.f32 %v587_v29, 0.0 }
 0x400   :  { %694 = vmatmul.msk.f32.vlgmr.msra.gmra.mxu0 %vm311_vm5, %v589_v31 }
 0x47d   :  { %v631_v36 = vpop.f32.mrf.mxu0 }
 0x47e   :  { %v632_v37 = vadd.f32 %v631_v36, %v594_v35 }
 0x480   :  { %v634_v38 = vmax.f32 %v632_v37, 0.0 }
 0x482   :  { %695 = vmatmul.msk.f32.vlgmr.msrb.gmra.mxu0 %vm99_vm4, %v634_v38 }
 0x4ff   :  { %v664_v40 = vpop.f32.mrf.mxu0 }
 0x500   :  { %v665_v41 = vadd.f32 %v664_v40, %v643_v39 }
 0x502   :  { %667 = vst [vmem:[#allocation7] sm:$0x3] %v665_v41 }
 0x503   :  { %678 = dma.vmem_to_hbm [thread:$0]  %s674_s27, 32, %s676_s30, [#allocation4]  }
 0x504   :  { %904 = dma.done.wait [#allocation4], 32  }
 0x505   :  { %905 = vsyncadd [#allocation4], 4294967264 }
 0x506   :  { %683 = vsyncpa [#allocation3], 1 }
 0x507   :  { %684 = vsyncpa [#allocation6], 1 }
 0x508   :  { %685 = vsyncpa [#allocation4], 1 }

</bundles_post_ra>
